<compile_context>
chip_gen: v7x
topology: tpu7x:2x2x1
jax: 0.10.0
libtpu: 0.0.40
codegen_flags: <defaults>
</compile_context>

<pallas_src>
import functools

import jax
import jax.numpy as jnp
from jax.experimental import pallas as pl
from jax.experimental.pallas import tpu as pltpu

_LANE = 128
_VMEM_BUDGET = 36 * 1024 * 1024          # target for double-buffered tiles
_VMEM_LIMIT_FLOOR = 32 * 1024 * 1024     # default scoped limit on v6e/v7x
_VMEM_LIMIT_CAP = 48 * 1024 * 1024       # leave headroom on v7x (64 MiB phys)
_WEIGHT_RESIDENT_MAX_BYTES = 12 * 1024 * 1024


def _round_up(x, m):
    return (x + m - 1) // m * m


def _sublane(dtype):
    # Packed-dtype row granularity: f32 -> 8, bf16/f16 -> 16, int8/fp8 -> 32.
    return {4: 8, 2: 16, 1: 32}.get(jnp.dtype(dtype).itemsize, 8)


def _pick_divisor(total, candidates):
    for c in candidates:
        if total % c == 0:
            return c
    return candidates[-1]


def _vmem_limit(footprint_bytes):
    # Footprint (already double-buffered) + headroom, floored at the scoped
    # default, capped well below v7x's physical VMEM.
    return int(min(max(2 * footprint_bytes, _VMEM_LIMIT_FLOOR), _VMEM_LIMIT_CAP))


def prepare_weight(weight):
    """One-time (init-time) weight prep for the Pallas linear kernel.

    Takes the PyTorch nn.Linear weight of shape (out_features, in_features),
    transposes it to (in_features, out_features) and zero-pads both dims up to
    multiples of 128 so every per-call tile is lane-dense.  Call once at model
    init, NOT per forward call.
    """
    n, k = weight.shape
    kp, np_pad = _round_up(k, _LANE), _round_up(n, _LANE)
    w = weight.T
    if (kp, np_pad) != (k, n):
        w = jnp.pad(w, ((0, kp - k), (0, np_pad - n)))
    return w


# ----------------------------- kernels ------------------------------------ #
def _linear_kernel_weight_resident(x_ref, w_ref, o_ref):
    # Whole (Kp, Np) weight is resident in VMEM; one MXU pass per batch tile.
    o_ref[...] = jnp.dot(
        x_ref[...], w_ref[...], preferred_element_type=jnp.float32
    ).astype(o_ref.dtype)


def _linear_kernel_acc_in_out(x_ref, w_ref, o_ref):
    # f32 output block is resident across the k axis: accumulate in place.
    @pl.when(pl.program_id(2) == 0)
    def _():
        o_ref[...] = jnp.zeros_like(o_ref)

    o_ref[...] += jnp.dot(
        x_ref[...], w_ref[...], preferred_element_type=jnp.float32
    )


def _linear_kernel_acc_in_scratch(x_ref, w_ref, o_ref, acc_ref):
    # Narrow output dtype: accumulate in f32 scratch, cast on the last k step.
    @pl.when(pl.program_id(2) == 0)
    def _():
        acc_ref[...] = jnp.zeros_like(acc_ref)

    acc_ref[...] += jnp.dot(
        x_ref[...], w_ref[...], preferred_element_type=jnp.float32
    )

    @pl.when(pl.program_id(2) == pl.num_programs(2) - 1)
    def _():
        o_ref[...] = acc_ref[...].astype(o_ref.dtype)


# ----------------------------- wrapper ------------------------------------ #
def linmodel_forward(x, w_prepared, out_features):
    """y = x @ weight.T  (nn.Linear with bias=False).

    x:          (batch, in_features)
    w_prepared: (Kp, Np) = prepare_weight(weight)  -- transposed + padded once.
    """
    b, k = x.shape
    kp, np_pad = w_prepared.shape
    assert kp >= k and kp % _LANE == 0 and np_pad % _LANE == 0
    n = out_features
    assert n <= np_pad

    in_dtype = x.dtype
    out_dtype = x.dtype
    in_item = jnp.dtype(in_dtype).itemsize
    out_item = jnp.dtype(out_dtype).itemsize
    sub = _sublane(in_dtype)
    # TODO(synk): optionally cast x / weight to bf16 (keeping the f32
    # accumulator) when numerics allow -- halves HBM traffic, ~2-3x MXU rate.

    w_bytes = kp * np_pad * in_item

    if w_bytes <= _WEIGHT_RESIDENT_MAX_BYTES:
        # ---- fast path: full weight resident in VMEM, grid over batch only --
        bm = min(_round_up(b, sub), 1024)

        def _fp(bm_):
            return (2 * (bm_ * kp + kp * np_pad) * in_item
                    + 2 * bm_ * np_pad * out_item)

        while _fp(bm) > _VMEM_BUDGET and bm > sub:
            bm = max(sub, _round_up(bm // 2, sub))
        footprint = _fp(bm)

        bp = _round_up(b, bm)
        if (bp, kp) != (b, k):
            x = jnp.pad(x, ((0, bp - b), (0, kp - k)))

        cost = pl.CostEstimate(
            flops=2 * bp * kp * np_pad,
            transcendentals=0,
            bytes_accessed=(bp * kp + kp * np_pad) * in_item
                           + bp * np_pad * out_item,
        )
        y = pl.pallas_call(
            _linear_kernel_weight_resident,
            out_shape=jax.ShapeDtypeStruct((bp, np_pad), out_dtype),
            grid_spec=pltpu.PrefetchScalarGridSpec(
                num_scalar_prefetch=0,
                grid=(bp // bm,),
                in_specs=[
                    pl.BlockSpec((bm, kp), lambda i: (i, 0)),       # x tile
                    pl.BlockSpec((kp, np_pad), lambda i: (0, 0)),   # full weight
                ],
                out_specs=pl.BlockSpec((bm, np_pad), lambda i: (i, 0)),
            ),
            compiler_params=pltpu.CompilerParams(
                dimension_semantics=("parallel",),
                vmem_limit_bytes=_vmem_limit(footprint),
            ),
            cost_estimate=cost,
        )(x, w_prepared)
    else:
        # ---- general path: (M, N, K) tiling, k innermost (reduction) --------
        bn = _pick_divisor(np_pad, (1024, 512, 256, 128))
        bk = _pick_divisor(kp, (512, 256, 128))
        bm = min(_round_up(b, sub), 1024)
        bp = _round_up(b, bm)

        # Keep >=2 blocks on a parallel axis so v7x's 2nd TensorCore has work.
        if bp // bm == 1 and np_pad // bn == 1 and bn > 128:
            bn //= 2

        acc_scratch = jnp.dtype(out_dtype) != jnp.dtype(jnp.float32)

        def _fp(bm_, bn_, bk_):
            fp = (2 * (bm_ * bk_ + bk_ * bn_) * in_item
                  + 2 * bm_ * bn_ * out_item)
            if acc_scratch:
                fp += bm_ * bn_ * 4
            return fp

        while _fp(bm, bn, bk) > _VMEM_BUDGET:
            if bm > 256:
                bm = _round_up(bm // 2, sub)
            elif bn > 256:
                bn //= 2
            elif bk > 128:
                bk //= 2
            else:
                break
        bp = _round_up(b, bm)
        footprint = _fp(bm, bn, bk)

        if (bp, kp) != (b, k):
            x = jnp.pad(x, ((0, bp - b), (0, kp - k)))

        cost = pl.CostEstimate(
            flops=2 * bp * kp * np_pad,
            transcendentals=0,
            bytes_accessed=(np_pad // bn) * bp * kp * in_item
                           + (bp // bm) * kp * np_pad * in_item
                           + bp * np_pad * out_item,
        )
        kernel = (_linear_kernel_acc_in_scratch if acc_scratch
                  else _linear_kernel_acc_in_out)
        scratch = [pltpu.VMEM((bm, bn), jnp.float32)] if acc_scratch else []
        y = pl.pallas_call(
            kernel,
            out_shape=jax.ShapeDtypeStruct((bp, np_pad), out_dtype),
            grid_spec=pltpu.PrefetchScalarGridSpec(
                num_scalar_prefetch=0,
                grid=(bp // bm, np_pad // bn, kp // bk),
                in_specs=[
                    pl.BlockSpec((bm, bk), lambda i, j, kk: (i, kk)),  # x
                    pl.BlockSpec((bk, bn), lambda i, j, kk: (kk, j)),  # weight
                ],
                out_specs=pl.BlockSpec((bm, bn), lambda i, j, kk: (i, j)),
                scratch_shapes=scratch,
            ),
            compiler_params=pltpu.CompilerParams(
                dimension_semantics=("parallel", "parallel", "arbitrary"),
                vmem_limit_bytes=_vmem_limit(footprint),
            ),
            cost_estimate=cost,
        )(x, w_prepared)

    if y.shape != (b, n):
        y = y[:b, :n]
    return y


if __name__ == "__main__":
    # Deterministic synthetic params/inputs (no checkpoint loading).
    in_size, out_size, batch = 32, 16, 8

    key = jax.random.PRNGKey(0)
    kx, kw = jax.random.split(key)
    x = jax.random.normal(kx, (batch, in_size), dtype=jnp.float32)
    # nn.Linear weight shape: (out_size, in_size)
    weight = jax.random.normal(kw, (out_size, in_size), dtype=jnp.float32) * 0.1

    # One-time init-time prep (transpose + lane-pad); not in the per-call path.
    w_prepared = jax.block_until_ready(prepare_weight(weight))

    fwd = jax.jit(functools.partial(linmodel_forward, out_features=out_size))
    y = jax.block_until_ready(fwd(x, w_prepared))

    # Sanity check against plain JAX reference.
    y_ref = x @ weight.T
    assert y.shape == (batch, out_size)
    assert jnp.allclose(y, y_ref, atol=1e-5, rtol=1e-5)

    print("KERNEL_OK")
</pallas_src>

<mosaic_0001>
module attributes {stable_mosaic.version = 11 : i64} {
  func.func @_linear_kernel_weight_resident(%arg0: i32, %arg1: memref<8x128xf32, #tpu.memory_space<vmem>>, %arg2: memref<128x128xf32, #tpu.memory_space<vmem>>, %arg3: memref<8x128xf32, #tpu.memory_space<vmem>>) attributes {dimension_semantics = [#tpu.dimension_semantics<parallel>], iteration_bounds = array<i64: 1>, scalar_prefetch = 0 : i64, scratch_operands = 0 : i64, tpu.core_type = #tpu.core_type<tc>, window_params = [{transform_indices = @transform_0, window_bounds = array<i64: 8, 128>}, {pipeline_mode = #tpu.pipeline_mode<synchronous>, transform_indices = @transform_1, window_bounds = array<i64: 128, 128>}, {transform_indices = @transform_2, window_bounds = array<i64: 8, 128>}]} {
    %c0 = arith.constant 0 : index
    %c0_0 = arith.constant 0 : index
    %0 = vector.load %arg1[%c0, %c0_0] : memref<8x128xf32, #tpu.memory_space<vmem>>, vector<8x128xf32>
    %c0_1 = arith.constant 0 : index
    %c0_2 = arith.constant 0 : index
    %1 = vector.load %arg2[%c0_1, %c0_2] : memref<128x128xf32, #tpu.memory_space<vmem>>, vector<128x128xf32>
    %cst = arith.constant dense<0.000000e+00> : vector<8x128xf32>
    %2 = tpu.matmul %0, %1, %cst {dimension_numbers = #tpu.dot_dimension_numbers<[1], [0], [0], [1], [0, 0, 1, 1], [], []>} : vector<8x128xf32>, vector<128x128xf32>, vector<8x128xf32> -> vector<8x128xf32>
    %c0_3 = arith.constant 0 : index
    %c0_4 = arith.constant 0 : index
    %3 = vector.load %arg3[%c0_3, %c0_4] : memref<8x128xf32, #tpu.memory_space<vmem>>, vector<8x128xf32>
    tpu.vector_store %arg3[%c0_3, %c0_4], %2 {strides = array<i32>} : memref<8x128xf32, #tpu.memory_space<vmem>>, vector<8x128xf32>,
    return
  }
  func.func @transform_0(%arg0: i32) -> (i32, i32) {
    %c0_i32 = arith.constant 0 : i32
    %c0_i32_0 = arith.constant 0 : i32
    return %arg0, %c0_i32 : i32, i32
  }
  func.func @transform_1(%arg0: i32) -> (i32, i32) {
    %c0_i32 = arith.constant 0 : i32
    %c0_i32_0 = arith.constant 0 : i32
    %c0_i32_1 = arith.constant 0 : i32
    return %c0_i32, %c0_i32_0 : i32, i32
  }
  func.func @transform_2(%arg0: i32) -> (i32, i32) {
    %c0_i32 = arith.constant 0 : i32
    %c0_i32_0 = arith.constant 0 : i32
    return %arg0, %c0_i32 : i32, i32
  }
}

</mosaic_0001>

<bundles_post_ra>
// kernel: linmodel_forward.1
= control target key start
LH: loop header
LB: loop body
LE: loop exit
PB: predicated region body
PF: predicated region fallthrough
CT: control target
= control target key end

     0   :  { %7 = vsyncpa [#allocation3], 0  ;;  %s309_s0 = inlined_call_operand.vmem [shape: f32[8,128], index: 0, kind: input, shape index: {}]   ;;  %s310_s1 = inlined_call_operand.hbm [shape: f32[128,128], index: 1, kind: input, shape index: {}]   ;;  %s311_s2 = inlined_call_operand.hbm [shape: f32[8,128], index: 2, kind: output, shape index: {}]  }
   0x1   :  { %8 = vsyncpa [#allocation4], 0  ;;  %s260_s9 = smov [#allocation2]   ;;  %s212_s13 = scalar_lea.hbm %s310_s1, 2048 }
   0x2   :  { %s16_s10 = sshll.u32 %s260_s9, 4  ;;  %p213_p0 = scmp.ne.s32.totalorder %s310_s1, %s212_s13  ;;  %s17_s10 = int_to_ptr.vmem [resolvable:$true] %s16_s10 }
   0x3   :  { %p216_p1 = scmp.lt.u32.totalorder %s212_s13, %s310_s1 }
   0x5   :  { %p218_p2 = pnand %p216_p1, %p213_p0 }
   0x7   :  { %221 = shalt.err (!%p218_p2)
}
   0x8   :  { %s222_s18 = scalar_lea.vmem %s17_s10, 2048  ;;  %p227_p4 = scmp.lt.s32.totalorder %s17_s10, %s17_s10 }
   0x9   :  { %p223_p3 = scmp.ne.s32.totalorder %s17_s10, %s222_s18  ;;  %p228_p5 = scmp.lt.s32.totalorder %s222_s18, %s222_s18 }
   0xb   :  { %p229_p6 = por %p228_p5, %p227_p4 }
   0xd   :  { %p230_p7 = pnand %p229_p6, %p223_p3 }
   0xf   :  { %233 = shalt.err (!%p230_p7)
}
  0x10   :  { %s261_s19 = smov 128   ;;  %s262_s20 = smov 8  }
  0x11   :  { %22 = dma.hbm_to_vmem [thread:$0]  %s310_s1, 2048, %s17_s10, [#allocation3], %s261_s19, %s261_s19, %s262_s20  }
  0x12   :  { %256 = dma.done.wait [#allocation3], 2048  }
  0x13   :  { %257 = vsyncadd [#allocation3], 4294965248  ;;  %v263_v0 = vmov 0.0|0.0   ;;  %vm264_vm0 = vmmov 0   ;;  %v265_v1 = vmov 0.0   ;;  %v27_v2 = vld [vmem:[#allocation2] sm:$0xff] }
  0x14   :  { %181 = vmatprep.subr.bf16.mxu0 %v263_v0  ;;  %178 = vmatprep.mubr.msk.f32.mxu0 %vm264_vm0, %v265_v1  ;;  %v28_v3 = vld [vmem:[#allocation2 + $0x8] sm:$0xff]  ;;  %v29_v4 = vld [vmem:[#allocation2 + $0x10] sm:$0xff]  ;;  %v30_v6 = vld [vmem:[#allocation2 + $0x18] sm:$0xff]  ;;  %s266_s24 = smov [#allocation5]  }
  0x15   :  { %v182_v5 = vpack.c.bf16 %v28_v3, %v27_v2  ;;  %v185_v7 = vpack.c.bf16 %v30_v6, %v29_v4  ;;  %v31_v8 = vld [vmem:[#allocation2 + $0x20] sm:$0xff]  ;;  %v32_v9 = vld [vmem:[#allocation2 + $0x28] sm:$0xff]  ;;  %v33_v11 = vld [vmem:[#allocation2 + $0x30] sm:$0xff]  ;;  %s120_s25 = sshll.u32 %s266_s24, 4  ;;  %s121_s25 = int_to_ptr.vmem [resolvable:$true] %s120_s25 }
  0x16   :  { %v188_v10 = vpack.c.bf16 %v32_v9, %v31_v8  ;;  %v34_v12 = vld [vmem:[#allocation2 + $0x38] sm:$0xff]  ;;  %v35_v14 = vld [vmem:[#allocation2 + $0x40] sm:$0xff]  ;;  %v36_v15 = vld [vmem:[#allocation2 + $0x48] sm:$0xff]  ;;  %s234_s26 = scalar_lea.vmem %s121_s25, 128  ;;  %p239_p9 = scmp.lt.s32.totalorder %s121_s25, %s121_s25 }
  0x17   :  { %183 = vmatpush3.bf16.msra.mxu0 %v182_v5  ;;  %v191_v13 = vpack.c.bf16 %v34_v12, %v33_v11  ;;  %v194_v16 = vpack.c.bf16 %v36_v15, %v35_v14  ;;  %v37_v17 = vld [vmem:[#allocation2 + $0x50] sm:$0xff]  ;;  %v38_v18 = vld [vmem:[#allocation2 + $0x58] sm:$0xff]  ;;  %v39_v20 = vld [vmem:[#allocation2 + $0x60] sm:$0xff]  ;;  %p235_p8 = scmp.ne.s32.totalorder %s121_s25, %s234_s26  ;;  %p240_p10 = scmp.lt.s32.totalorder %s234_s26, %s234_s26 }
  0x18   :  { %184 = vmatprep.subr.bf16.mxu0 %v263_v0  ;;  %v197_v19 = vpack.c.bf16 %v38_v18, %v37_v17  ;;  %v40_v21 = vld [vmem:[#allocation2 + $0x68] sm:$0xff]  ;;  %v41_v23 = vld [vmem:[#allocation2 + $0x70] sm:$0xff]  ;;  %v42_v24 = vld [vmem:[#allocation2 + $0x78] sm:$0xff] }
  0x19   :  { %v200_v22 = vpack.c.bf16 %v40_v21, %v39_v20  ;;  %v203_v25 = vpack.c.bf16 %v42_v24, %v41_v23  ;;  %v26_v26 = vld [vmem:[%s309_s0] sm:$0xff]  ;;  %p241_p11 = por %p240_p10, %p239_p9 }
  0x1b   :  { %186 = vmatpush3.bf16.msra.mxu0 %v185_v7  ;;  %p242_p12 = pnand %p241_p11, %p235_p8 }
  0x1c   :  { %187 = vmatprep.subr.bf16.mxu0 %v263_v0 }
  0x1f   :  { %189 = vmatpush3.bf16.msra.mxu0 %v188_v10 }
  0x20   :  { %190 = vmatprep.subr.bf16.mxu0 %v263_v0 }
  0x23   :  { %192 = vmatpush3.bf16.msra.mxu0 %v191_v13 }
  0x24   :  { %193 = vmatprep.subr.bf16.mxu0 %v263_v0 }
  0x27   :  { %195 = vmatpush3.bf16.msra.mxu0 %v194_v16 }
  0x28   :  { %196 = vmatprep.subr.bf16.mxu0 %v263_v0 }
  0x2b   :  { %198 = vmatpush3.bf16.msra.mxu0 %v197_v19 }
  0x2c   :  { %199 = vmatprep.subr.bf16.mxu0 %v263_v0 }
  0x2f   :  { %201 = vmatpush3.bf16.msra.mxu0 %v200_v22 }
  0x30   :  { %202 = vmatprep.subr.bf16.mxu0 %v263_v0 }
  0x33   :  { %204 = vmatpush3.bf16.msra.mxu0 %v203_v25 }
  0x36   :  { %179 = vmatmul.mubr.f32.vlgmr.msra.gmra.mrb[0].mxu0 %v26_v26 }
 0x109   :  { %v109_v27 = vpop.f32.mrb[0].mxu0 }
 0x10a   :  { %113 = vst [vmem:[#allocation5] sm:$0xff] %v109_v27  ;;  %v180_v28 = vpop.f32.mrb[1].mxu0 }
 0x10b   :  { %245 = shalt.err (!%p242_p12)
}
 0x10c   :  { %s246_s29 = scalar_lea.hbm %s311_s2, 128 }
 0x10d   :  { %p247_p13 = scmp.ne.s32.totalorder %s311_s2, %s246_s29  ;;  %p250_p0 = scmp.lt.u32.totalorder %s246_s29, %s311_s2 }
 0x10f   :  { %p252_p1 = pnand %p250_p0, %p247_p13 }
 0x111   :  { %255 = shalt.err (!%p252_p1)
}
 0x112   :  { %123 = dma.vmem_to_hbm [thread:$0]  %s121_s25, 128, %s311_s2, [#allocation4]  }
 0x113   :  { %258 = dma.done.wait [#allocation4], 128  }
 0x114   :  { %259 = vsyncadd [#allocation4], 4294967168 }
 0x115   :  { %127 = vsyncpa [#allocation3], 1 }
 0x116   :  { %128 = vsyncpa [#allocation4], 1 }

</bundles_post_ra>
